<compile_context>
chip_gen: v6e
topology: v6e:2x2x1
jax: 0.10.0
libtpu: 0.0.40
codegen_flags: <defaults>
</compile_context>

<pallas_src>
import jax
import jax.numpy as jnp
from jax.experimental import pallas as pl
from jax.experimental.pallas import tpu as pltpu


def _choose_tile_k(K, N, itemsize, target_bytes=1 << 20):
    """Largest divisor of K whose [tile_k, N] tile fits in ~target_bytes.

    Prefers multiples of 8 (sublane aligned) when the tile does not span all
    of K.  ~1 MiB tiles keep double-buffered inputs + f32 intermediates far
    below the scoped-VMEM defaults of every TPU generation while leaving
    enough grid steps to hide DMA latency.
    """
    cap = max(1, target_bytes // max(1, N * itemsize))
    if K <= cap:
        return K
    best_aligned, best_any = None, 1
    for d in range(1, min(K, cap) + 1):
        if K % d == 0:
            best_any = d
            if d % 8 == 0:
                best_aligned = d
    return best_aligned if best_aligned is not None else best_any


def _decoder_kernel(mix_ref, mask_ref, w_ref, b_ref, out_ref):
    # Block shapes at grid point (b, kt, s):
    #   mix_ref  : [1, TK, N]        mixture_e[b, kt*TK:(kt+1)*TK, :]
    #   mask_ref : [1, TK, N]        est_mask[b, kt*TK:(kt+1)*TK, s, :]
    #              (or [1, TK, 1, N] on the N % 128 != 0 fallback path)
    #   w_ref    : [N, L]
    #   b_ref    : [1, L]
    #   out_ref  : [1, 1, TK, L]     est_source[b, s, kt*TK:(kt+1)*TK, :]
    mix = mix_ref[0]                                      # [TK, N]
    if len(mask_ref.shape) == 3:
        msk = mask_ref[0]                                 # [TK, N]
    else:
        msk = mask_ref[0, :, 0, :]                        # [TK, N]
    src = mix * msk                                       # VPU elementwise
    est = jnp.dot(src, w_ref[...],
                  preferred_element_type=jnp.float32)     # MXU, f32 accumulate
    est = est + b_ref[...]                                # + bias [1, L]
    out_ref[0, 0] = est.astype(out_ref.dtype)


def decoder_forward(mixture_e, est_mask, norm_coef, weight, bias, *,
                    input_dtype=None, tile_k=None):
    """mixture_e [B,K,N], est_mask [B,K,nspk,N], norm_coef [B,K,1] (unused),
    weight [N,L] (== nn.Linear(N,L).weight.T), bias [L]
    -> est_source [B,nspk,K,L].

    input_dtype: optional dtype (e.g. jnp.bfloat16) for the HBM transfer of
    mixture_e / est_mask; accumulation stays f32 and the output keeps the
    original mixture dtype.
    """
    del norm_coef  # matches PyTorch: norm_coef does not affect the output
    B, K, N = mixture_e.shape
    _, _, nspk, _ = est_mask.shape
    L = weight.shape[1]
    out_dtype = mixture_e.dtype

    if input_dtype is not None:
        mixture_e = mixture_e.astype(input_dtype)
        est_mask = est_mask.astype(input_dtype)

    itemsize = jnp.dtype(mixture_e.dtype).itemsize
    tk = tile_k if tile_k is not None else _choose_tile_k(K, N, itemsize)
    assert K % tk == 0, f"tile_k={tk} must divide K={K}"
    n_kt = K // tk

    bias2d = bias.reshape(1, L)

    if N % 128 == 0:
        # Dense, fully (8,128)-aligned mask tiles: fold nspk into the lane dim
        # (free row-major reshape) and pick the speaker via the block index.
        mask_in = est_mask.reshape(B, K, nspk * N)
        mask_spec = pl.BlockSpec((1, tk, N), lambda b, kt, s: (b, kt, s))
    else:
        # Fallback: keep the 4-D layout, speaker dim as a size-1 block.
        mask_in = est_mask
        mask_spec = pl.BlockSpec((1, tk, 1, N), lambda b, kt, s: (b, kt, s, 0))

    out = pl.pallas_call(
        _decoder_kernel,
        out_shape=jax.ShapeDtypeStruct((B, nspk, K, L), out_dtype),
        grid_spec=pltpu.PrefetchScalarGridSpec(
            num_scalar_prefetch=0,
            grid=(B, n_kt, nspk),            # nspk innermost: mix/W stay resident
            in_specs=[
                pl.BlockSpec((1, tk, N), lambda b, kt, s: (b, kt, 0)),
                mask_spec,
                pl.BlockSpec((N, L), lambda b, kt, s: (0, 0)),
                pl.BlockSpec((1, L), lambda b, kt, s: (0, 0)),
            ],
            out_specs=pl.BlockSpec((1, 1, tk, L), lambda b, kt, s: (b, s, kt, 0)),
        ),
        compiler_params=pltpu.CompilerParams(
            # Every output block is written exactly once -> all axes parallel
            # (lets the runtime shard across both v7x TensorCores).
            dimension_semantics=("parallel", "parallel", "parallel"),
            # ~1 MiB tiles use <10 MiB; 32 MiB limit leaves headroom on every
            # generation (incl. v7x's 64 MiB physical VMEM).
            vmem_limit_bytes=32 * 1024 * 1024,
        ),
    )(mixture_e, mask_in, weight, bias2d)
    return out


def decoder_ref(mixture_e, est_mask, norm_coef, weight, bias):
    """Pure-JAX reference mirroring the PyTorch forward (accurate f32)."""
    src = mixture_e[:, :, None, :] * est_mask                      # [B,K,nspk,N]
    est = jnp.einsum("bksn,nl->bksl", src, weight,
                     precision=jax.lax.Precision.HIGHEST) + bias   # [B,K,nspk,L]
    return jnp.transpose(est, (0, 2, 1, 3))                        # [B,nspk,K,L]


if __name__ == "__main__":
    # Small but lane-aligned shapes consistent with the module
    # (N = encoder basis dim, L = frame length).
    B, K, nspk, N, L = 2, 64, 2, 128, 16

    key = jax.random.PRNGKey(0)
    k1, k2, k3, k4, k5 = jax.random.split(key, 5)

    mixture_e = jax.random.normal(k1, (B, K, N), dtype=jnp.float32)
    est_mask = jax.random.normal(k2, (B, K, nspk, N), dtype=jnp.float32)
    norm_coef = jax.random.normal(k3, (B, K, 1), dtype=jnp.float32)
    weight = jax.random.normal(k4, (N, L), dtype=jnp.float32) * 0.1
    bias = jax.random.normal(k5, (L,), dtype=jnp.float32) * 0.1

    ref = decoder_ref(mixture_e, est_mask, norm_coef, weight, bias)

    # 1) default f32 path (single K tile at this toy size)
    out = decoder_forward(mixture_e, est_mask, norm_coef, weight, bias)
    out = jax.block_until_ready(out)
    assert out.shape == (B, nspk, K, L), out.shape
    assert jnp.allclose(out, ref, atol=5e-3, rtol=5e-3), "f32 path mismatch"

    # 2) explicitly K-tiled path (tile_k < K exercises the tiled pipeline)
    out_t = decoder_forward(mixture_e, est_mask, norm_coef, weight, bias,
                            tile_k=16)
    out_t = jax.block_until_ready(out_t)
    assert jnp.allclose(out_t, ref, atol=5e-3, rtol=5e-3), "tiled path mismatch"

    # 3) bf16 HBM-transfer path (f32 accumulation); tolerance relaxed for the
    #    bf16 rounding of the inputs.
    out_bf = decoder_forward(mixture_e, est_mask, norm_coef, weight, bias,
                             input_dtype=jnp.bfloat16, tile_k=16)
    out_bf = jax.block_until_ready(out_bf)
    assert out_bf.shape == (B, nspk, K, L), out_bf.shape
    assert jnp.allclose(out_bf, ref, atol=5e-2, rtol=5e-2), "bf16 path mismatch"

    print("KERNEL_OK")
</pallas_src>

<mosaic_0001>
module attributes {stable_mosaic.version = 11 : i64} {
  func.func @_decoder_kernel(%arg0: i32, %arg1: i32, %arg2: i32, %arg3: memref<1x64x128xf32, #tpu.memory_space<vmem>>, %arg4: memref<1x64x128xf32, #tpu.memory_space<vmem>>, %arg5: memref<128x16xf32, #tpu.memory_space<vmem>>, %arg6: memref<1x16xf32, #tpu.memory_space<vmem>>, %arg7: memref<1x1x64x16xf32, #tpu.memory_space<vmem>>) attributes {dimension_semantics = [#tpu.dimension_semantics<parallel>, #tpu.dimension_semantics<parallel>, #tpu.dimension_semantics<parallel>], iteration_bounds = array<i64: 2, 1, 2>, scalar_prefetch = 0 : i64, scratch_operands = 0 : i64, tpu.core_type = #tpu.core_type<tc>, window_params = [{transform_indices = @transform_0, window_bounds = array<i64: 1, 64, 128>}, {transform_indices = @transform_1, window_bounds = array<i64: 1, 64, 128>}, {pipeline_mode = #tpu.pipeline_mode<synchronous>, transform_indices = @transform_2, window_bounds = array<i64: 128, 16>}, {pipeline_mode = #tpu.pipeline_mode<synchronous>, transform_indices = @transform_3, window_bounds = array<i64: 1, 16>}, {transform_indices = @transform_4, window_bounds = array<i64: 1, 1, 64, 16>}]} {
    %c0 = arith.constant 0 : index
    %c0_0 = arith.constant 0 : index
    %c0_1 = arith.constant 0 : index
    %0 = vector.load %arg3[%c0, %c0_0, %c0_1] : memref<1x64x128xf32, #tpu.memory_space<vmem>>, vector<1x64x128xf32>
    %1 = vector.shape_cast %0 : vector<1x64x128xf32> to vector<64x128xf32>
    %c0_2 = arith.constant 0 : index
    %c0_3 = arith.constant 0 : index
    %c0_4 = arith.constant 0 : index
    %2 = vector.load %arg4[%c0_2, %c0_3, %c0_4] : memref<1x64x128xf32, #tpu.memory_space<vmem>>, vector<1x64x128xf32>
    %3 = vector.shape_cast %2 : vector<1x64x128xf32> to vector<64x128xf32>
    %4 = arith.mulf %1, %3 : vector<64x128xf32>
    %c0_5 = arith.constant 0 : index
    %c0_6 = arith.constant 0 : index
    %5 = vector.load %arg5[%c0_5, %c0_6] : memref<128x16xf32, #tpu.memory_space<vmem>>, vector<128x16xf32>
    %cst = arith.constant dense<0.000000e+00> : vector<64x16xf32>
    %6 = tpu.matmul %4, %5, %cst {dimension_numbers = #tpu.dot_dimension_numbers<[1], [0], [0], [1], [0, 0, 1, 1], [], []>} : vector<64x128xf32>, vector<128x16xf32>, vector<64x16xf32> -> vector<64x16xf32>
    %c0_7 = arith.constant 0 : index
    %c0_8 = arith.constant 0 : index
    %7 = vector.load %arg6[%c0_7, %c0_8] : memref<1x16xf32, #tpu.memory_space<vmem>>, vector<1x16xf32>
    %8 = vector.broadcast %7 : vector<1x16xf32> to vector<64x16xf32>
    %9 = arith.addf %6, %8 : vector<64x16xf32>
    %c0_9 = arith.constant 0 : index
    %c0_10 = arith.constant 0 : index
    %c0_11 = arith.constant 0 : index
    %c0_12 = arith.constant 0 : index
    %10 = vector.load %arg7[%c0_9, %c0_10, %c0_11, %c0_12] : memref<1x1x64x16xf32, #tpu.memory_space<vmem>>, vector<1x1x64x16xf32>
    %11 = vector.shape_cast %10 : vector<1x1x64x16xf32> to vector<64x16xf32>
    %12 = vector.shape_cast %9 : vector<64x16xf32> to vector<1x1x64x16xf32>
    tpu.vector_store %arg7[%c0_9, %c0_10, %c0_11, %c0_12], %12 {strides = array<i32>} : memref<1x1x64x16xf32, #tpu.memory_space<vmem>>, vector<1x1x64x16xf32>,
    return
  }
  func.func @transform_0(%arg0: i32, %arg1: i32, %arg2: i32) -> (i32, i32, i32) {
    %c0_i32 = arith.constant 0 : i32
    %c0_i32_0 = arith.constant 0 : i32
    return %arg0, %arg1, %c0_i32 : i32, i32, i32
  }
  func.func @transform_1(%arg0: i32, %arg1: i32, %arg2: i32) -> (i32, i32, i32) {
    %c0_i32 = arith.constant 0 : i32
    return %arg0, %arg1, %arg2 : i32, i32, i32
  }
  func.func @transform_2(%arg0: i32, %arg1: i32, %arg2: i32) -> (i32, i32) {
    %c0_i32 = arith.constant 0 : i32
    %c0_i32_0 = arith.constant 0 : i32
    %c0_i32_1 = arith.constant 0 : i32
    return %c0_i32, %c0_i32_0 : i32, i32
  }
  func.func @transform_3(%arg0: i32, %arg1: i32, %arg2: i32) -> (i32, i32) {
    %c0_i32 = arith.constant 0 : i32
    %c0_i32_0 = arith.constant 0 : i32
    %c0_i32_1 = arith.constant 0 : i32
    return %c0_i32, %c0_i32_0 : i32, i32
  }
  func.func @transform_4(%arg0: i32, %arg1: i32, %arg2: i32) -> (i32, i32, i32, i32) {
    %c0_i32 = arith.constant 0 : i32
    %c0_i32_0 = arith.constant 0 : i32
    return %arg0, %arg2, %arg1, %c0_i32 : i32, i32, i32, i32
  }
}

</mosaic_0001>

<bundles_post_ra>
// kernel: tpu_custom_call.1
= control target key start
LH: loop header
LB: loop body
LE: loop exit
PB: predicated region body
PF: predicated region fallthrough
CT: control target
= control target key end

     0   :  { %9 = vsyncpa [#allocation3], 0  ;;  %s1128_s0 = inlined_call_operand.vmem [shape: f32[2,64,128], index: 0, kind: input, shape index: {}]   ;;  %s1129_s1 = inlined_call_operand.hbm [shape: f32[2,64,256], index: 1, kind: input, shape index: {}]   ;;  %s1130_s2 = inlined_call_operand.vmem [shape: f32[128,16], index: 2, kind: input, shape index: {}]   ;;  %s1131_s3 = inlined_call_operand.vmem [shape: f32[1,16], index: 3, kind: input, shape index: {}]   ;;  %s1132_s4 = inlined_call_operand.vmem [shape: f32[2,2,64,16], index: 4, kind: output, shape index: {}]  }
   0x1   :  { %11 = vsyncpa [#allocation3 + $0x1], 0  ;;  %s917_s15 = smov 0   ;;  %s919_s16 = smov 0  }
   0x2   :  { %s921_s17 = smov 0   ;;  %s923_s18 = smov 0  }
   0x3   :  { %s925_s19 = smov 0   ;;  %s927_s20 = smov 0  }
   0x4   :  { %s929_s21 = smov 0   ;;  %s931_s22 = smov 0  }
   0x5 LB: > { %s600_s23 = sadd.s32 4294967295, %s886_s22   ;;  %s29_s24 = sadd.s32 1, %s878_s20  ;;  %s886_s22 = sphi %s931_s22, %s17_s22   ;;  %s882_s21 = sphi %s929_s21, %s1145_s21   ;;  %s878_s20 = sphi %s927_s20, %s1144_s20   ;;  %s874_s19 = sphi %s925_s19, %s1143_s19   ;;  %s870_s18 = sphi %s923_s18, %s1142_s18   ;;  %s866_s17 = sphi %s921_s17, %s1141_s17   ;;  %s862_s16 = sphi %s919_s16, %s1140_s16   ;;  %s858_s15 = sphi %s917_s15, %s1139_s15  }
   0x6   : > { %p30_p0 = scmp.ge.s32.totalorder %s29_s24, 2  ;;  %s36_s25 = sadd.s32 1, %s882_s21 }
   0x7   : > { %s75_s26 = sadd.s32 1, %s866_s17  ;;  %p82_p1 = scmp.ne.s32.totalorder %s866_s17, %s862_s16 }
   0x8   : > { %s1147_s24 = smov (%p30_p0, %s29_s24), 0  ;;  %s1149_s25 = smov (!%p30_p0, %s36_s25), %s882_s21 }
   0x9   : > { %s71_s27 = ssub.s32 %s878_s20, %s1147_s24  ;;  %p83_p2 = scmp.eq.s32.totalorder %s886_s22, 0 }
   0xa   : > { %p38_p3 = scmp.ge.s32.totalorder %s1149_s25, 2  ;;  %p88_p4 = scmp.ne.s32.totalorder %s862_s16, %s858_s15 }
   0xb   : > { %p968_p5 = por %p83_p2, %p82_p1  ;;  %p89_p6 = scmp.eq.s32.totalorder %s600_s23, 0 }
   0xc   : > { %s1151_s25 = smov (%p38_p3, %s1149_s25), 0  ;;  %p724_p8 = scmp.lt.s32.totalorder %s886_s22, 4 }
   0xd   : > { %1135 = sst [smem:[#allocation5_spill]] %s1151_s25  ;;  %p974_p7 = por %p89_p6, %p88_p4 }
   0xe   : > { %s68_s30 = ssub.s32 %s882_s21, %s1151_s25  ;;  %s203_s6 = sand.u32 1, %s866_s17  }
   0xf   : > { %s72_s5 = sor.u32 %s71_s27, %s68_s30  ;;  %s604_s7 = sshll.u32 %s203_s6, 6 }
  0x10   : > { %p73_p9 = scmp.eq.s32.totalorder %s72_s5, 0  ;;  %s605_s8 = sshll.u32 %s882_s21, 4 }
  0x11   : > { %s215_s10 = sadd.s32 %s878_s20, %s605_s8  ;;  %s207_s12 = scalar_lea.vmem [#allocation2], %s604_s7 }
  0x12   : > { %s984_s9 = scalar_select %p73_p9, %s866_s17, %s75_s26  }
  0x13   : > { %s606_s11 = sshll.u32 %s215_s10, 7  ;;  %s218_s13 = sshll.u32 %s207_s12, 4  ;;  %s219_s13 = int_to_ptr.vmem [resolvable:$true] %s218_s13 }
  0x14   : > { %s217_s23 = scalar_lea.hbm %s1129_s1, %s606_s11  ;;  %p994_p10 = pnand %p724_p8, %p968_p5 }
  0x15   : > { %p607_p11 = scmp.ge.s32.totalorder %s886_s22, 1  ;;  %s204_s27 = scalar_lea.sflag [#allocation3], %s203_s6 }
  0x16   : > { %p794_p12 = pneg %p994_p10  ;;  %s805_s26 = scalar_lea.vmem %s219_s13, 1024 }
  0x17   : > { %p806_p13 = scmp.ne.s32.totalorder %s219_s13, %s805_s26  ;;  %s888_s30 = smov [#allocation2]  }
  0x18   : > { %s810_s5 = sshll.u32 %s888_s30, 4  ;;  %s811_s5 = int_to_ptr.vmem [resolvable:$false] %s810_s5 }
  0x19   : > { %p808_p0 = pnand %p806_p13, %p794_p12  ;;  %s812_s7 = scalar_lea.vmem %s811_s5, 2048 }
  0x1a   : > { %p813_p2 = scmp.lt.s32.totalorder %s219_s13, %s811_s5  ;;  %p814_p3 = scmp.lt.s32.totalorder %s812_s7, %s805_s26 }
  0x1b   : > { %p809_p1 = pneg %p808_p0 }
  0x1c   : > { %p815_p4 = por %p814_p3, %p813_p2 }
  0x1e   : > { %p816_p5 = pnand %p815_p4, %p809_p1 }
  0x20   : > { %819 = shalt.err (!%p816_p5)
}
  0x21   : > { %s889_s28 = smov 256   ;;  %s890_s6 = smov 128  }
  0x22   : > { %s891_s8 = smov 8   ;;  %p226_p6 = scmp.lt.s32.totalorder %s886_s22, 5 }
  0x23   : > { %723 = dma.hbm_to_vmem [thread:$0]  (!%p994_p10), %s217_s23, 1024, %s219_s13, %s204_s27, %s889_s28, %s890_s6, %s891_s8  }
  0x24   : > { %p227_p8 = pnand %p607_p11, %p226_p6 }
  0x25   : > { %s232_s10 = sand.u32 (!%p227_p8), 1, %s862_s16  }
  0x26   : > { %230 = sbr.rel (%p227_p8) target bundleno = 280 (0x118), region = 36  ;;  %s608_s11 = sshll.u32 (!%p227_p8), %s232_s10, 6 }
  0x27   : > { %s233_s12 = scalar_lea.sflag (!%p227_p8), [#allocation3], %s232_s10  ;;  %s1007_s14 = scalar_lea.vmem (!%p227_p8), [#allocation2], %s608_s11 }
  0x2b   : > { %853 = dma.done.wait (%p974_p7), %s233_s12, 1024  }
  0x2c   : > { %855 = vsyncadd (%p974_p7), %s233_s12, 4294966272  ;;  %v342_v0 = vld [vmem:[%s1130_s2 + $0x78] sm:$0xff]  ;;  %v341_v1 = vld [vmem:[%s1130_s2 + $0x70] sm:$0xff]  ;;  %p279_p7 = scmp.lt.s32.totalorder %s874_s19, 1  ;;  %p292_p9 = scmp.lt.s32.totalorder %s870_s18, 1  ;;  %vm455_vm0 = vcmask 130048  }
  0x2d   : > { %642 = vmatprep.subr.mxu0 %v342_v0  ;;  %686 = vmatprep.subr.mxu1 %v342_v0  ;;  %v340_v2 = vld [vmem:[%s1130_s2 + $0x68] sm:$0xff]  ;;  %v339_v3 = vld [vmem:[%s1130_s2 + $0x60] sm:$0xff]  ;;  %v338_v4 = vld [vmem:[%s1130_s2 + $0x58] sm:$0xff] }
  0x2e   : > { %643 = vmatpush3.msra.mxu0 %v342_v0  ;;  %702 = vmatpush3.msra.mxu1 %v342_v0  ;;  %v337_v5 = vld [vmem:[%s1130_s2 + $0x50] sm:$0xff]  ;;  %v336_v6 = vld [vmem:[%s1130_s2 + $0x48] sm:$0xff]  ;;  %v335_v7 = vld [vmem:[%s1130_s2 + $0x40] sm:$0xff]  ;;  %s1153_s19 = smov (!%p279_p7, %s874_s19), 1  ;;  %s1155_s18 = smov (!%p292_p9, %s870_s18), 1 }
  0x2f   : > { %644 = vmatprep.subr.mxu0 %v341_v1  ;;  %687 = vmatprep.subr.mxu1 %v341_v1  ;;  %v334_v8 = vld [vmem:[%s1130_s2 + $0x38] sm:$0xff]  ;;  %v333_v9 = vld [vmem:[%s1130_s2 + $0x30] sm:$0xff]  ;;  %v332_v10 = vld [vmem:[%s1130_s2 + $0x28] sm:$0xff]  ;;  %s617_s29 = sshll.u32 %s1153_s19, 6  ;;  %s611_s23 = sshll.u32 %s1155_s18, 3 }
  0x30   : > { %645 = vmatpush3.msra.mxu0 %v341_v1  ;;  %703 = vmatpush3.msra.mxu1 %v341_v1  ;;  %v331_v11 = vld [vmem:[%s1130_s2 + $0x20] sm:$0xff]  ;;  %v330_v12 = vld [vmem:[%s1130_s2 + $0x18] sm:$0xff]  ;;  %s1060_s10 = scalar_lea.vmem %s1128_s0, %s617_s29  ;;  %v329_v13 = vld [vmem:[%s1130_s2 + $0x10] sm:$0xff]  ;;  %s612_s27 = sshll.u32 %s1153_s19, 4 }
  0x31   : > { %646 = vmatprep.subr.mxu0 %v340_v2  ;;  %688 = vmatprep.subr.mxu1 %v340_v2  ;;  %v328_v14 = vld [vmem:[%s1130_s2 + $0x8] sm:$0xff]  ;;  %v303_v15 = vld [vmem:[%s1060_s10] sm:$0xff]  ;;  %v305_v24 = vld [vmem:[%s1060_s10 + $0x10] sm:$0xff]  ;;  %s299_s29 = sadd.s32 %s612_s27, %s611_s23 }
  0x32   : > { %647 = vmatpush3.msra.mxu0 %v340_v2  ;;  %704 = vmatpush3.msra.mxu1 %v340_v2  ;;  %v311_v16 = vld [vmem:[%s1007_s14] sm:$0xff]  ;;  %v304_v20 = vld [vmem:[%s1060_s10 + $0x8] sm:$0xff]  ;;  %v313_v25 = vld [vmem:[%s1007_s14 + $0x10] sm:$0xff]  ;;  %s613_s30 = sshll.u32 %s299_s29, 3 }
  0x33   : > { %648 = vmatprep.subr.mxu0 %v339_v3  ;;  %689 = vmatprep.subr.mxu1 %v339_v3  ;;  %v307_v17 = vld [vmem:[%s1060_s10 + $0x20] sm:$0xff]  ;;  %v312_v21 = vld [vmem:[%s1007_s14 + $0x8] sm:$0xff]  ;;  %v309_v26 = vld [vmem:[%s1060_s10 + $0x30] sm:$0xff]  ;;  %v319_v28 = vmul.f32 %v311_v16, %v303_v15  ;;  %v321_v33 = vmul.f32 %v313_v25, %v305_v24  ;;  %s301_s6 = scalar_lea.vmem %s1132_s4, %s613_s30 }
  0x34   : > { %649 = vmatpush3.msra.mxu0 %v339_v3  ;;  %705 = vmatpush3.msra.mxu1 %v339_v3  ;;  %v327_v18 = vld [vmem:[%s1130_s2] sm:$0xff]  ;;  %v308_v22 = vld [vmem:[%s1060_s10 + $0x28] sm:$0xff]  ;;  %v317_v27 = vld [vmem:[%s1007_s14 + $0x30] sm:$0xff]  ;;  %v320_v30 = vmul.f32 %v312_v21, %v304_v20 }
  0x35   : > { %650 = vmatprep.subr.mxu0 %v338_v4  ;;  %690 = vmatprep.subr.mxu1 %v338_v4  ;;  %v315_v19 = vld [vmem:[%s1007_s14 + $0x20] sm:$0xff]  ;;  %v316_v23 = vld [vmem:[%s1007_s14 + $0x28] sm:$0xff]  ;;  %v306_v32 = vld [vmem:[%s1060_s10 + $0x18] sm:$0xff]  ;;  %v325_v34 = vmul.f32 %v317_v27, %v309_v26 }
  0x36   : > { %651 = vmatpush3.msra.mxu0 %v338_v4  ;;  %706 = vmatpush3.msra.mxu1 %v338_v4  ;;  %v323_v29 = vmul.f32 %v315_v19, %v307_v17  ;;  %v324_v31 = vmul.f32 %v316_v23, %v308_v22  ;;  %v314_v35 = vld [vmem:[%s1007_s14 + $0x18] sm:$0xff]  ;;  %v614_v40 = vld [vmem:[%s1131_s3] ss:$0 sm:$0xff] }
  0x37   : > { %652 = vmatprep.subr.mxu0 %v337_v5  ;;  %691 = vmatprep.subr.mxu1 %v337_v5  ;;  %v310_v36 = vld [vmem:[%s1060_s10 + $0x38] sm:$0xff]  ;;  %v322_v38 = vmul.f32 %v314_v35, %v306_v32 }
  0x38   : > { %653 = vmatpush3.msra.mxu0 %v337_v5  ;;  %707 = vmatpush3.msra.mxu1 %v337_v5  ;;  %v318_v37 = vld [vmem:[%s1007_s14 + $0x38] sm:$0xff] }
  0x39   : > { %654 = vmatprep.subr.mxu0 %v336_v6  ;;  %692 = vmatprep.subr.mxu1 %v336_v6  ;;  %v326_v39 = vmul.f32 %v318_v37, %v310_v36 }
  0x3a   : > { %655 = vmatpush3.msra.mxu0 %v336_v6  ;;  %708 = vmatpush3.msra.mxu1 %v336_v6 }
  0x3b   : > { %656 = vmatprep.subr.mxu0 %v335_v7  ;;  %693 = vmatprep.subr.mxu1 %v335_v7 }
  0x3c   : > { %657 = vmatpush3.msra.mxu0 %v335_v7  ;;  %709 = vmatpush3.msra.mxu1 %v335_v7 }
  0x3d   : > { %658 = vmatprep.subr.mxu0 %v334_v8  ;;  %694 = vmatprep.subr.mxu1 %v334_v8 }
  0x3e   : > { %659 = vmatpush3.msra.mxu0 %v334_v8  ;;  %710 = vmatpush3.msra.mxu1 %v334_v8 }
  0x3f   : > { %660 = vmatprep.subr.mxu0 %v333_v9  ;;  %695 = vmatprep.subr.mxu1 %v333_v9 }
  0x40   : > { %661 = vmatpush3.msra.mxu0 %v333_v9  ;;  %711 = vmatpush3.msra.mxu1 %v333_v9 }
  0x41   : > { %662 = vmatprep.subr.mxu0 %v332_v10  ;;  %696 = vmatprep.subr.mxu1 %v332_v10 }
  0x42   : > { %663 = vmatpush3.msra.mxu0 %v332_v10  ;;  %712 = vmatpush3.msra.mxu1 %v332_v10 }
  0x43   : > { %664 = vmatprep.subr.mxu0 %v331_v11  ;;  %697 = vmatprep.subr.mxu1 %v331_v11 }
  0x44   : > { %665 = vmatpush3.msra.mxu0 %v331_v11  ;;  %713 = vmatpush3.msra.mxu1 %v331_v11 }
  0x45   : > { %666 = vmatprep.subr.mxu0 %v330_v12  ;;  %698 = vmatprep.subr.mxu1 %v330_v12 }
  0x46   : > { %667 = vmatpush3.msra.mxu0 %v330_v12  ;;  %714 = vmatpush3.msra.mxu1 %v330_v12 }
  0x47   : > { %668 = vmatprep.subr.mxu0 %v329_v13  ;;  %699 = vmatprep.subr.mxu1 %v329_v13 }
  0x48   : > { %669 = vmatpush3.msra.mxu0 %v329_v13  ;;  %715 = vmatpush3.msra.mxu1 %v329_v13 }
  0x49   : > { %670 = vmatprep.subr.mxu0 %v328_v14  ;;  %700 = vmatprep.subr.mxu1 %v328_v14 }
  0x4a   : > { %671 = vmatpush3.msra.mxu0 %v328_v14  ;;  %716 = vmatpush3.msra.mxu1 %v328_v14 }
  0x4b   : > { %672 = vmatprep.subr.mxu0 %v327_v18  ;;  %701 = vmatprep.subr.mxu1 %v327_v18 }
  0x4c   : > { %673 = vmatpush3.msra.mxu0 %v327_v18  ;;  %717 = vmatpush3.msra.mxu1 %v327_v18 }
  0x4d   : > { %674 = vmatprep.mubr.f32.mxu0 %v319_v28  ;;  %680 = vmatprep.mubr.f32.mxu1 %v323_v29 }
  0x4e   : > { %675 = vmatmul.mubr.f32.vlgmr.msra.gmra.mxu0 %v320_v30  ;;  %681 = vmatmul.mubr.f32.vlgmr.msra.gmra.mxu1 %v324_v31 }
  0x4f   : > { %677 = vmatprep.mubr.f32.mxu0 %v321_v33  ;;  %683 = vmatprep.mubr.f32.mxu1 %v325_v34 }
  0x52   : > { %678 = vmatmul.mubr.f32.gmra.mxu0 %v322_v38  ;;  %684 = vmatmul.mubr.f32.gmra.mxu1 %v326_v39 }
 0x10e   : > { %v676_v41 = vpop.f32.mrf.mxu0  ;;  %v682_v42 = vpop.f32.mrf.mxu1 }
 0x10f   : > { %v422_v43 = vadd.f32 %v676_v41, %v614_v40  ;;  %v442_v44 = vadd.f32 %v682_v42, %v614_v40 }
 0x110   : > { %v416_v45 = vpop.f32.mrf.mxu0  ;;  %v436_v46 = vpop.f32.mrf.mxu1 }
 0x111   : > { %457 = vst.msk [vmem:[%s301_s6 + $0x8] sm:$0xff] %vm455_vm0, %v422_v43  ;;  %461 = vst.msk [vmem:[%s301_s6 + $0x28] sm:$0xff] %vm455_vm0, %v442_v44  ;;  %v417_v47 = vadd.f32 %v614_v40, %v416_v45  ;;  %v437_v48 = vadd.f32 %v614_v40, %v436_v46 }
 0x112   : > { %v679_v49 = vpop.f32.mrf.mxu0  ;;  %v685_v50 = vpop.f32.mrf.mxu1 }
 0x113   : > { %456 = vst.msk [vmem:[%s301_s6] sm:$0xff] %vm455_vm0, %v417_v47  ;;  %460 = vst.msk [vmem:[%s301_s6 + $0x20] sm:$0xff] %vm455_vm0, %v437_v48  ;;  %v432_v51 = vadd.f32 %v679_v49, %v614_v40  ;;  %v452_v52 = vadd.f32 %v685_v50, %v614_v40 }
 0x114   : > { %v426_v53 = vpop.f32.mrf.mxu0  ;;  %v446_v54 = vpop.f32.mrf.mxu1 }
 0x115   : > { %459 = vst.msk [vmem:[%s301_s6 + $0x18] sm:$0xff] %vm455_vm0, %v432_v51  ;;  %463 = vst.msk [vmem:[%s301_s6 + $0x38] sm:$0xff] %vm455_vm0, %v452_v52  ;;  %v427_v55 = vadd.f32 %v614_v40, %v426_v53  ;;  %v447_v56 = vadd.f32 %v614_v40, %v446_v54 }
 0x117   : > { %458 = vst.msk [vmem:[%s301_s6 + $0x10] sm:$0xff] %vm455_vm0, %v427_v55  ;;  %462 = vst.msk [vmem:[%s301_s6 + $0x30] sm:$0xff] %vm455_vm0, %v447_v56 }
 0x118 PF: > { %s17_s22 = sadd.s32 1, %s886_s22   ;;  %s1138_s8 = sld [smem:[#allocation5_spill]] }
 0x119   : > { %p14_p10 = scmp.ge.s32.totalorder %s17_s22, 6   ;;  %s1139_s15 = smov %s862_s16 }
 0x11a   : > { %s1140_s16 = smov %s866_s17  ;;  %s1141_s17 = smov %s984_s9 }
 0x11b   : > { %s1142_s18 = smov %s878_s20  ;;  %s1143_s19 = smov %s882_s21 }
 0x11c   : > { %s1144_s20 = smov %s1147_s24  ;;  %16 = sbr.rel (!%p14_p10) target bundleno = 5 (0x5), region = 79 }
 0x11e   : > { %s1145_s21 = smov %s1138_s8 }
 0x121   :  { %502 = vsyncpa [#allocation3], 1 }
 0x122   :  { %504 = vsyncpa [#allocation3 + $0x1], 1 }

</bundles_post_ra>
